<compile_context>
chip_gen: v7x
topology: tpu7x:2x2x1
jax: 0.10.0
libtpu: 0.0.40
codegen_flags: <defaults>
</compile_context>

<pallas_src>
import functools

import jax
import jax.numpy as jnp
from jax.experimental import pallas as pl
from jax.experimental.pallas import tpu as pltpu

CLIENT_NUM = 20            # forced by BatchNorm1d(21) in the reference module
P_MAX = 1.0
BN_EPS = 1e-5
PAD = 128                  # lane-dense padded width for x / fc2 / output
MAX_BATCH = 2048           # gridless whole-batch-in-VMEM design; see TODO below
_PER_ROW_VMEM = 16 * 1024  # conservative per-row live-set estimate (bytes)

# TODO(synk): for batches beyond MAX_BATCH (and roughly 2x earlier on v7x,
# which has only 64 MiB physical VMEM), restructure into a two-pass
# batch-tiled kernel: pass 1 accumulates per-layer sum / sum-of-squares over an
# "arbitrary" batch-tile grid axis into resident scratch, pass 2 normalizes and
# applies the next layer over a "parallel" batch axis so both v7x TensorCores
# are used.  The gridless design below is the right call for small batches.


def _fcn_kg_kernel(x_ref, w_ref, bn_ref, out_ref, *,
                   num_clients, p_max, inv_batch):
    """Whole forward pass for one (small) batch resident in VMEM."""
    x = x_ref[...]                 # (B, 128) f32; cols >= num_clients are 0
    bn = bn_ref[...]               # (6, 256)  f32 packed gamma/beta

    def bn_fused(h, gamma, beta):
        # training-mode BatchNorm1d folded into one scale/shift with
        # single-pass (sum, sum-of-squares) statistics:
        #   mu = s1/B ; var = s2/B - mu^2 (biased) ; s = gamma*rsqrt(var+eps)
        #   out = h*s + (beta - mu*s)
        s1 = jnp.sum(h, axis=0, keepdims=True)
        s2 = jnp.sum(h * h, axis=0, keepdims=True)
        mu = s1 * inv_batch
        var = s2 * inv_batch - mu * mu
        s = gamma * jax.lax.rsqrt(var + BN_EPS)
        t = beta - mu * s
        return h * s + t

    # fc1 -> BN1 -> relu   (linear bias omitted: cancels under training-mode BN)
    h = jnp.dot(x.astype(jnp.bfloat16), w_ref[0:128, :],
                preferred_element_type=jnp.float32)                     # (B, 256)
    h = jnp.maximum(bn_fused(h, bn[0:1, :], bn[1:2, :]), 0.0)

    # fc2 -> BN2 -> relu   (feature dim zero-padded to 128 lanes; padded
    # columns stay exactly 0 through BN (mu=var=0, beta=0) and relu)
    h = jnp.dot(h.astype(jnp.bfloat16), w_ref[128:384, 0:PAD],
                preferred_element_type=jnp.float32)                     # (B, 128)
    h = jnp.maximum(bn_fused(h, bn[2:3, 0:PAD], bn[3:4, 0:PAD]), 0.0)

    # output -> BN3 -> sigmoid   (cols num_clients+1 .. 127 are zero-padded;
    # BN is per-column so the padded columns do not perturb the valid ones)
    y = jnp.dot(h.astype(jnp.bfloat16), w_ref[384:512, 0:PAD],
                preferred_element_type=jnp.float32)                     # (B, 128)
    y = jax.nn.sigmoid(bn_fused(y, bn[4:5, 0:PAD], bn[5:6, 0:PAD]))

    # Structure_Map(y, x) over the full 128-lane width.  Padded lanes have
    # x == 0 -> tmp1 == 0 while tmp2 = y*y_last > 0, so power == 0 there; one
    # iota mask-select assembles the output row (no slices / concatenates /
    # zero materialization) -> a single lane-dense unmasked store.
    y_last = y[:, num_clients:num_clients + 1]                          # (B, 1)
    tmp1 = y_last * x
    tmp2 = x + y * y_last
    power = jnp.minimum(tmp1 * pl.reciprocal(tmp2 * tmp2, approx=True), p_max)
    col = jax.lax.broadcasted_iota(jnp.int32, power.shape, 1)
    out_ref[...] = jnp.where(col == num_clients, y, power)


def _kaiming_uniform(key, shape_out_in):
    """torch.nn.init.kaiming_uniform_ (a=0, fan_in, leaky_relu): U(-b, b), b=sqrt(6/fan_in)."""
    out_f, in_f = shape_out_in
    bound = jnp.sqrt(6.0 / in_f)
    return jax.random.uniform(key, (out_f, in_f), jnp.float32, -bound, bound)


def _linear_bias(key, out_f, in_f):
    """default nn.Linear bias init: U(-1/sqrt(fan_in), 1/sqrt(fan_in))."""
    bound = 1.0 / jnp.sqrt(float(in_f))
    return jax.random.uniform(key, (out_f,), jnp.float32, -bound, bound)


def init_params(key, client_num=CLIENT_NUM):
    """Parameters pre-transposed / pre-padded / pre-packed in kernel format."""
    if client_num != CLIENT_NUM:
        raise ValueError("BatchNorm1d(21) in the reference forces client_num == 20")
    k = jax.random.split(key, 6)
    # torch layout (out_features, in_features)
    w1_t = _kaiming_uniform(k[0], (256, client_num))
    w2_t = _kaiming_uniform(k[1], (64, 256))
    w3_t = _kaiming_uniform(k[2], (client_num + 1, 64))
    b1 = _linear_bias(k[3], 256, client_num)
    b2 = _linear_bias(k[4], 64, 256)
    b3 = _linear_bias(k[5], client_num + 1, 64)

    # One packed bf16 weight slab, kernel format (in, out), zero-padded:
    #   rows   0..127 : w1  (in = client_num padded to 128, out = 256)
    #   rows 128..383 : w2  (in = 256, out = 64 padded to 128 lanes)
    #   rows 384..511 : w3  (in = 64 padded to 128, out = 21 padded to 128)
    wslab = jnp.zeros((512, 256), jnp.bfloat16)
    wslab = wslab.at[0:client_num, :].set(w1_t.T.astype(jnp.bfloat16))
    wslab = wslab.at[128:384, 0:64].set(w2_t.T.astype(jnp.bfloat16))
    wslab = wslab.at[384:448, 0:client_num + 1].set(w3_t.T.astype(jnp.bfloat16))

    # Packed BN affine slab (fresh module: gamma=1, beta=0), f32:
    #   row 0/1: gamma1/beta1 (256)   row 2/3: gamma2/beta2 (padded to 128)
    #   row 4/5: gamma3/beta3 (padded to 128)
    bn = jnp.zeros((6, 256), jnp.float32)
    bn = bn.at[0, :].set(1.0)
    bn = bn.at[2, :PAD].set(1.0)
    bn = bn.at[4, :PAD].set(1.0)

    return dict(
        wslab=wslab, bn=bn,
        # original-format weights + biases kept only for the pure-JAX reference
        # (biases cancel under training-mode BN, so the kernel does not use them)
        w1_t=w1_t, w2_t=w2_t, w3_t=w3_t, b1=b1, b2=b2, b3=b3,
    )


@functools.partial(jax.jit, static_argnames=("client_num", "p_max"))
def my_fcn_knowledge_guided(x, params, *, client_num=CLIENT_NUM, p_max=P_MAX):
    B = x.shape[0]
    if B > MAX_BATCH:
        raise ValueError(
            f"gridless whole-batch-resident kernel supports batch <= {MAX_BATCH}; "
            "see TODO(synk) at the top of this file for the batch-tiled restructure")

    # Lane-dense input: zero-pad the channel dim to 128.  The padded x is also
    # reused by the Structure_Map epilogue, where padded lanes must read 0.
    x_pad = jnp.zeros((B, PAD), jnp.float32).at[:, :client_num].set(
        x.astype(jnp.float32))

    kernel = functools.partial(_fcn_kg_kernel, num_clients=client_num,
                               p_max=p_max, inv_batch=1.0 / B)
    vmem_limit = min((24 << 20) + B * _PER_ROW_VMEM, 48 << 20)

    out_padded = pl.pallas_call(
        kernel,
        out_shape=jax.ShapeDtypeStruct((B, PAD), jnp.float32),
        in_specs=[pl.BlockSpec(memory_space=pltpu.MemorySpace.VMEM)] * 3,
        out_specs=pl.BlockSpec(memory_space=pltpu.MemorySpace.VMEM),
        compiler_params=pltpu.CompilerParams(vmem_limit_bytes=vmem_limit),
    )(x_pad, params["wslab"], params["bn"])

    # NOTE: at training-scale batches, prefer handing the padded (B, 128)
    # output straight to the consumer instead of paying this extra HBM pass.
    return out_padded[:, :client_num + 1]


def _reference_jax(x, params, client_num=CLIENT_NUM, p_max=P_MAX):
    """Pure-JAX mirror of the PyTorch forward (biases INCLUDED, torch-order BN
    statistics).  Matmuls use bf16 operands with f32 accumulation so the
    comparison exercises the kernel's algebra (bias drop, BN fold, padding,
    mask-select epilogue), not the bf16-vs-f32 MXU precision choice."""
    def lin(a, w_t, b):
        return jnp.dot(a.astype(jnp.bfloat16), w_t.T.astype(jnp.bfloat16),
                       preferred_element_type=jnp.float32) + b

    def bn(h):
        mu = h.mean(0, keepdims=True)
        var = ((h - mu) ** 2).mean(0, keepdims=True)
        return (h - mu) / jnp.sqrt(var + BN_EPS)

    h = jax.nn.relu(bn(lin(x, params["w1_t"], params["b1"])))
    h = jax.nn.relu(bn(lin(h, params["w2_t"], params["b2"])))
    y = jax.nn.sigmoid(bn(lin(h, params["w3_t"], params["b3"])))
    y_last = y[:, client_num:client_num + 1]
    power = jnp.minimum(y_last * x / (x + y[:, :client_num] * y_last) ** 2, p_max)
    return jnp.concatenate([power, y_last], axis=1)


if __name__ == "__main__":
    key = jax.random.PRNGKey(0)
    pkey, xkey = jax.random.split(key)

    params = init_params(pkey, CLIENT_NUM)

    batch = 8
    # positive "channel" inputs, as in the wireless power-allocation setting
    x = jax.random.uniform(xkey, (batch, CLIENT_NUM), jnp.float32, 0.5, 1.5)

    out = my_fcn_knowledge_guided(x, params)
    out = jax.block_until_ready(out)

    ref = _reference_jax(x, params)
    assert out.shape == (batch, CLIENT_NUM + 1)
    # tolerance covers: approx EUP reciprocal, the E[h^2]-mu^2 variance form,
    # and transcendental (sigmoid/rsqrt) differences between Mosaic and XLA
    assert jnp.allclose(out, ref, atol=5e-3, rtol=5e-3), (
        "mismatch vs reference: max |diff| = "
        f"{float(jnp.max(jnp.abs(out - ref)))}")

    print("KERNEL_OK")
</pallas_src>

<mosaic_0001>
module attributes {stable_mosaic.version = 11 : i64} {
  func.func @_fcn_kg_kernel(%arg0: memref<8x128xf32, #tpu.memory_space<vmem>>, %arg1: memref<512x256xbf16, #tpu.memory_space<vmem>>, %arg2: memref<6x256xf32, #tpu.memory_space<vmem>>, %arg3: memref<8x128xf32, #tpu.memory_space<vmem>>) attributes {dimension_semantics = [], scalar_prefetch = 0 : i64, scratch_operands = 0 : i64, tpu.core_type = #tpu.core_type<tc>} {
    %c0 = arith.constant 0 : index
    %c0_0 = arith.constant 0 : index
    %0 = vector.load %arg0[%c0, %c0_0] : memref<8x128xf32, #tpu.memory_space<vmem>>, vector<8x128xf32>
    %c0_1 = arith.constant 0 : index
    %c0_2 = arith.constant 0 : index
    %1 = vector.load %arg2[%c0_1, %c0_2] : memref<6x256xf32, #tpu.memory_space<vmem>>, vector<6x256xf32>
    %2 = arith.truncf %0 : vector<8x128xf32> to vector<8x128xbf16>
    %c0_3 = arith.constant 0 : index
    %c0_4 = arith.constant 0 : index
    %3 = vector.load %arg1[%c0_3, %c0_4] : memref<512x256xbf16, #tpu.memory_space<vmem>>, vector<128x256xbf16>
    %cst = arith.constant dense<0.000000e+00> : vector<8x256xf32>
    %4 = tpu.matmul %2, %3, %cst {dimension_numbers = #tpu.dot_dimension_numbers<[1], [0], [0], [1], [0, 0, 1, 1], [], []>} : vector<8x128xbf16>, vector<128x256xbf16>, vector<8x256xf32> -> vector<8x256xf32>
    %5 = vector.extract_strided_slice %1 {offsets = [0, 0], sizes = [1, 256], strides = [1, 1]} : vector<6x256xf32> to vector<1x256xf32>
    %6 = vector.extract_strided_slice %1 {offsets = [1, 0], sizes = [1, 256], strides = [1, 1]} : vector<6x256xf32> to vector<1x256xf32>
    %cst_5 = arith.constant dense<0.000000e+00> : vector<256xf32>
    %7 = vector.multi_reduction <add>, %4, %cst_5 [0] : vector<8x256xf32> to vector<256xf32>
    %8 = vector.shape_cast %7 : vector<256xf32> to vector<1x256xf32>
    %9 = arith.mulf %4, %4 : vector<8x256xf32>
    %cst_6 = arith.constant dense<0.000000e+00> : vector<256xf32>
    %10 = vector.multi_reduction <add>, %9, %cst_6 [0] : vector<8x256xf32> to vector<256xf32>
    %11 = vector.shape_cast %10 : vector<256xf32> to vector<1x256xf32>
    %cst_7 = arith.constant 1.250000e-01 : f32
    %12 = vector.broadcast %cst_7 : f32 to vector<1x256xf32>
    %13 = arith.mulf %8, %12 : vector<1x256xf32>
    %cst_8 = arith.constant 1.250000e-01 : f32
    %14 = vector.broadcast %cst_8 : f32 to vector<1x256xf32>
    %15 = arith.mulf %11, %14 : vector<1x256xf32>
    %16 = arith.mulf %13, %13 : vector<1x256xf32>
    %17 = arith.subf %15, %16 : vector<1x256xf32>
    %cst_9 = arith.constant 9.99999974E-6 : f32
    %18 = vector.broadcast %cst_9 : f32 to vector<1x256xf32>
    %19 = arith.addf %17, %18 : vector<1x256xf32>
    %20 = math.rsqrt %19 : vector<1x256xf32>
    %21 = arith.mulf %5, %20 : vector<1x256xf32>
    %22 = arith.mulf %13, %21 : vector<1x256xf32>
    %23 = arith.subf %6, %22 : vector<1x256xf32>
    %24 = vector.broadcast %21 : vector<1x256xf32> to vector<8x256xf32>
    %25 = arith.mulf %4, %24 : vector<8x256xf32>
    %26 = vector.broadcast %23 : vector<1x256xf32> to vector<8x256xf32>
    %27 = arith.addf %25, %26 : vector<8x256xf32>
    %cst_10 = arith.constant 0.000000e+00 : f32
    %28 = vector.broadcast %cst_10 : f32 to vector<8x256xf32>
    %29 = arith.maximumf %27, %28 : vector<8x256xf32>
    %30 = arith.truncf %29 : vector<8x256xf32> to vector<8x256xbf16>
    %c128 = arith.constant 128 : index
    %c0_11 = arith.constant 0 : index
    %31 = vector.load %arg1[%c128, %c0_11] : memref<512x256xbf16, #tpu.memory_space<vmem>>, vector<256x128xbf16>
    %cst_12 = arith.constant dense<0.000000e+00> : vector<8x128xf32>
    %32 = tpu.matmul %30, %31, %cst_12 {dimension_numbers = #tpu.dot_dimension_numbers<[1], [0], [0], [1], [0, 0, 1, 1], [], []>} : vector<8x256xbf16>, vector<256x128xbf16>, vector<8x128xf32> -> vector<8x128xf32>
    %33 = vector.extract_strided_slice %1 {offsets = [2, 0], sizes = [1, 128], strides = [1, 1]} : vector<6x256xf32> to vector<1x128xf32>
    %34 = vector.extract_strided_slice %1 {offsets = [3, 0], sizes = [1, 128], strides = [1, 1]} : vector<6x256xf32> to vector<1x128xf32>
    %cst_13 = arith.constant dense<0.000000e+00> : vector<128xf32>
    %35 = vector.multi_reduction <add>, %32, %cst_13 [0] : vector<8x128xf32> to vector<128xf32>
    %36 = vector.shape_cast %35 : vector<128xf32> to vector<1x128xf32>
    %37 = arith.mulf %32, %32 : vector<8x128xf32>
    %cst_14 = arith.constant dense<0.000000e+00> : vector<128xf32>
    %38 = vector.multi_reduction <add>, %37, %cst_14 [0] : vector<8x128xf32> to vector<128xf32>
    %39 = vector.shape_cast %38 : vector<128xf32> to vector<1x128xf32>
    %cst_15 = arith.constant 1.250000e-01 : f32
    %40 = vector.broadcast %cst_15 : f32 to vector<1x128xf32>
    %41 = arith.mulf %36, %40 : vector<1x128xf32>
    %cst_16 = arith.constant 1.250000e-01 : f32
    %42 = vector.broadcast %cst_16 : f32 to vector<1x128xf32>
    %43 = arith.mulf %39, %42 : vector<1x128xf32>
    %44 = arith.mulf %41, %41 : vector<1x128xf32>
    %45 = arith.subf %43, %44 : vector<1x128xf32>
    %cst_17 = arith.constant 9.99999974E-6 : f32
    %46 = vector.broadcast %cst_17 : f32 to vector<1x128xf32>
    %47 = arith.addf %45, %46 : vector<1x128xf32>
    %48 = math.rsqrt %47 : vector<1x128xf32>
    %49 = arith.mulf %33, %48 : vector<1x128xf32>
    %50 = arith.mulf %41, %49 : vector<1x128xf32>
    %51 = arith.subf %34, %50 : vector<1x128xf32>
    %52 = vector.broadcast %49 : vector<1x128xf32> to vector<8x128xf32>
    %53 = arith.mulf %32, %52 : vector<8x128xf32>
    %54 = vector.broadcast %51 : vector<1x128xf32> to vector<8x128xf32>
    %55 = arith.addf %53, %54 : vector<8x128xf32>
    %cst_18 = arith.constant 0.000000e+00 : f32
    %56 = vector.broadcast %cst_18 : f32 to vector<8x128xf32>
    %57 = arith.maximumf %55, %56 : vector<8x128xf32>
    %58 = arith.truncf %57 : vector<8x128xf32> to vector<8x128xbf16>
    %c384 = arith.constant 384 : index
    %c0_19 = arith.constant 0 : index
    %59 = vector.load %arg1[%c384, %c0_19] : memref<512x256xbf16, #tpu.memory_space<vmem>>, vector<128x128xbf16>
    %cst_20 = arith.constant dense<0.000000e+00> : vector<8x128xf32>
    %60 = tpu.matmul %58, %59, %cst_20 {dimension_numbers = #tpu.dot_dimension_numbers<[1], [0], [0], [1], [0, 0, 1, 1], [], []>} : vector<8x128xbf16>, vector<128x128xbf16>, vector<8x128xf32> -> vector<8x128xf32>
    %61 = vector.extract_strided_slice %1 {offsets = [4, 0], sizes = [1, 128], strides = [1, 1]} : vector<6x256xf32> to vector<1x128xf32>
    %62 = vector.extract_strided_slice %1 {offsets = [5, 0], sizes = [1, 128], strides = [1, 1]} : vector<6x256xf32> to vector<1x128xf32>
    %cst_21 = arith.constant dense<0.000000e+00> : vector<128xf32>
    %63 = vector.multi_reduction <add>, %60, %cst_21 [0] : vector<8x128xf32> to vector<128xf32>
    %64 = vector.shape_cast %63 : vector<128xf32> to vector<1x128xf32>
    %65 = arith.mulf %60, %60 : vector<8x128xf32>
    %cst_22 = arith.constant dense<0.000000e+00> : vector<128xf32>
    %66 = vector.multi_reduction <add>, %65, %cst_22 [0] : vector<8x128xf32> to vector<128xf32>
    %67 = vector.shape_cast %66 : vector<128xf32> to vector<1x128xf32>
    %cst_23 = arith.constant 1.250000e-01 : f32
    %68 = vector.broadcast %cst_23 : f32 to vector<1x128xf32>
    %69 = arith.mulf %64, %68 : vector<1x128xf32>
    %cst_24 = arith.constant 1.250000e-01 : f32
    %70 = vector.broadcast %cst_24 : f32 to vector<1x128xf32>
    %71 = arith.mulf %67, %70 : vector<1x128xf32>
    %72 = arith.mulf %69, %69 : vector<1x128xf32>
    %73 = arith.subf %71, %72 : vector<1x128xf32>
    %cst_25 = arith.constant 9.99999974E-6 : f32
    %74 = vector.broadcast %cst_25 : f32 to vector<1x128xf32>
    %75 = arith.addf %73, %74 : vector<1x128xf32>
    %76 = math.rsqrt %75 : vector<1x128xf32>
    %77 = arith.mulf %61, %76 : vector<1x128xf32>
    %78 = arith.mulf %69, %77 : vector<1x128xf32>
    %79 = arith.subf %62, %78 : vector<1x128xf32>
    %80 = vector.broadcast %77 : vector<1x128xf32> to vector<8x128xf32>
    %81 = arith.mulf %60, %80 : vector<8x128xf32>
    %82 = vector.broadcast %79 : vector<1x128xf32> to vector<8x128xf32>
    %83 = arith.addf %81, %82 : vector<8x128xf32>
    %84 = arith.negf %83 : vector<8x128xf32>
    %85 = math.exp %84 : vector<8x128xf32>
    %cst_26 = arith.constant 1.000000e+00 : f32
    %86 = vector.broadcast %cst_26 : f32 to vector<8x128xf32>
    %87 = arith.addf %86, %85 : vector<8x128xf32>
    %88 = arith.divf %86, %87 : vector<8x128xf32>
    %89 = vector.extract_strided_slice %88 {offsets = [0, 20], sizes = [8, 1], strides = [1, 1]} : vector<8x128xf32> to vector<8x1xf32>
    %90 = vector.broadcast %89 : vector<8x1xf32> to vector<8x128xf32>
    %91 = arith.mulf %90, %0 : vector<8x128xf32>
    %92 = vector.broadcast %89 : vector<8x1xf32> to vector<8x128xf32>
    %93 = arith.mulf %88, %92 : vector<8x128xf32>
    %94 = arith.addf %0, %93 : vector<8x128xf32>
    %95 = arith.mulf %94, %94 : vector<8x128xf32>
    %96 = tpu.reciprocal %95 {approx = true} : vector<8x128xf32> -> vector<8x128xf32>
    %97 = arith.mulf %91, %96 : vector<8x128xf32>
    %cst_27 = arith.constant 1.000000e+00 : f32
    %98 = vector.broadcast %cst_27 : f32 to vector<8x128xf32>
    %99 = arith.minimumf %97, %98 : vector<8x128xf32>
    %100 = tpu.iota {dimensions = array<i32: 1>} : vector<8x128xi32>
    %c20_i32 = arith.constant 20 : i32
    %101 = vector.broadcast %c20_i32 : i32 to vector<8x128xi32>
    %102 = arith.cmpi eq, %100, %101 : vector<8x128xi32>
    %103 = arith.select %102, %88, %99 : vector<8x128xi1>, vector<8x128xf32>
    %c0_28 = arith.constant 0 : index
    %c0_29 = arith.constant 0 : index
    %104 = vector.load %arg3[%c0_28, %c0_29] : memref<8x128xf32, #tpu.memory_space<vmem>>, vector<8x128xf32>
    tpu.vector_store %arg3[%c0_28, %c0_29], %103 {strides = array<i32>} : memref<8x128xf32, #tpu.memory_space<vmem>>, vector<8x128xf32>,
    return
  }
}

</mosaic_0001>

<bundles_post_ra>
// kernel: my_fcn_knowledge_guided.1
= control target key start
LH: loop header
LB: loop body
LE: loop exit
PB: predicated region body
PF: predicated region fallthrough
CT: control target
= control target key end

     0   :  { %8 = vsyncpa [#allocation3], 0  ;;  %s923_s0 = inlined_call_operand.vmem [shape: f32[8,128], index: 0, kind: input, shape index: {}]   ;;  %s924_s1 = inlined_call_operand.hbm [shape: bf16[512,256], index: 1, kind: input, shape index: {}]   ;;  %s925_s2 = inlined_call_operand.vmem [shape: f32[6,256], index: 2, kind: input, shape index: {}]   ;;  %s926_s3 = inlined_call_operand.hbm [shape: f32[8,128], index: 3, kind: output, shape index: {}]  }
   0x1   :  { %9 = vsyncpa [#allocation4], 0  ;;  %s838_s12 = smov [#allocation2]   ;;  %s790_s16 = scalar_lea.hbm %s924_s1, 8192 }
   0x2   :  { %s17_s13 = sshll.u32 %s838_s12, 4  ;;  %p791_p0 = scmp.ne.s32.totalorder %s924_s1, %s790_s16  ;;  %s18_s13 = int_to_ptr.vmem [resolvable:$true] %s17_s13 }
   0x3   :  { %p794_p1 = scmp.lt.u32.totalorder %s790_s16, %s924_s1 }
   0x5   :  { %p796_p2 = pnand %p794_p1, %p791_p0 }
   0x7   :  { %799 = shalt.err (!%p796_p2)
}
   0x8   :  { %s800_s21 = scalar_lea.vmem %s18_s13, 8192  ;;  %p805_p4 = scmp.lt.s32.totalorder %s18_s13, %s18_s13 }
   0x9   :  { %p801_p3 = scmp.ne.s32.totalorder %s18_s13, %s800_s21  ;;  %p806_p5 = scmp.lt.s32.totalorder %s800_s21, %s800_s21 }
   0xb   :  { %p807_p6 = por %p806_p5, %p805_p4 }
   0xd   :  { %p808_p7 = pnand %p807_p6, %p801_p3 }
   0xf   :  { %811 = shalt.err (!%p808_p7)
}
  0x10   :  { %s839_s22 = smov 128   ;;  %s840_s23 = smov 8  }
  0x11   :  { %23 = dma.hbm_to_vmem [thread:$0]  %s924_s1, 8192, %s18_s13, [#allocation3], %s839_s22, %s839_s22, %s840_s23  }
  0x12   :  { %834 = dma.done.wait [#allocation3], 8192  }
  0x13   :  { %835 = vsyncadd [#allocation3], 4294959104  ;;  %v841_v0 = vmov 0   ;;  %v728_v1 = vld [vmem:[#allocation2 + $0x4] ss:$8 sps:$4 sm:$0xff]   ;;  %vm843_vm0 = vmmov 0  }
  0x14   :  { %162 = vmatprep.mubr.bf16.mxu0 %v841_v0  ;;  %v730_v2 = vld [vmem:[#allocation2] ss:$8 sps:$4 sm:$0xff]   ;;  %130 = vmatprep.subr.bf16.mxu0 %v728_v1  ;;  %v731_v3 = vld [vmem:[#allocation2 + $0x14] ss:$8 sps:$4 sm:$0xff]   ;;  %v733_v4 = vld [vmem:[#allocation2 + $0x10] ss:$8 sps:$4 sm:$0xff]  }
  0x15   :  { %131 = vmatpush1.bf16.msra.mxu0 %v730_v2  ;;  %v734_v5 = vld [vmem:[#allocation2 + $0x24] ss:$8 sps:$4 sm:$0xff]   ;;  %v736_v6 = vld [vmem:[#allocation2 + $0x20] ss:$8 sps:$4 sm:$0xff]   ;;  %v737_v7 = vld [vmem:[#allocation2 + $0x34] ss:$8 sps:$4 sm:$0xff]  }
  0x16   :  { %132 = vmatprep.subr.bf16.mxu0 %v731_v3  ;;  %v739_v8 = vld [vmem:[#allocation2 + $0x30] ss:$8 sps:$4 sm:$0xff]   ;;  %v740_v9 = vld [vmem:[#allocation2 + $0x44] ss:$8 sps:$4 sm:$0xff]   ;;  %v742_v10 = vld [vmem:[#allocation2 + $0x40] ss:$8 sps:$4 sm:$0xff]  }
  0x17   :  { %v743_v11 = vld [vmem:[#allocation2 + $0x54] ss:$8 sps:$4 sm:$0xff]   ;;  %v745_v12 = vld [vmem:[#allocation2 + $0x50] ss:$8 sps:$4 sm:$0xff]   ;;  %v746_v13 = vld [vmem:[#allocation2 + $0x64] ss:$8 sps:$4 sm:$0xff]  }
  0x18   :  { %v748_v14 = vld [vmem:[#allocation2 + $0x60] ss:$8 sps:$4 sm:$0xff]   ;;  %v749_v15 = vld [vmem:[#allocation2 + $0x74] ss:$8 sps:$4 sm:$0xff]   ;;  %v751_v16 = vld [vmem:[#allocation2 + $0x70] ss:$8 sps:$4 sm:$0xff]  }
  0x19   :  { %133 = vmatpush1.bf16.msra.mxu0 %v733_v4  ;;  %v881_v17 = vld [vmem:[%s923_s0] sm:$0xff]  ;;  %v754_v21 = vld [vmem:[#allocation2 + $0x110] ss:$8 sps:$4 sm:$0xff]  }
  0x1a   :  { %134 = vmatprep.subr.bf16.mxu0 %v734_v5  ;;  %v33_v18 = vpack.c.bf16 %v881_v17, %v881_v17  ;;  %v752_v19 = vld [vmem:[#allocation2 + $0x100] ss:$8 sps:$4 sm:$0xff]   ;;  %v755_v22 = vld [vmem:[#allocation2 + $0x90] ss:$8 sps:$4 sm:$0xff]  }
  0x1b   :  { %v753_v20 = vld [vmem:[#allocation2 + $0x80] ss:$8 sps:$4 sm:$0xff]   ;;  %668 = vmatprep.subr.bf16.mxu1 %v752_v19  ;;  %v758_v25 = vld [vmem:[#allocation2 + $0x130] ss:$8 sps:$4 sm:$0xff]  }
  0x1c   :  { %669 = vmatpush3.bf16.msra.mxu1 %v753_v20  ;;  %v756_v23 = vld [vmem:[#allocation2 + $0x120] ss:$8 sps:$4 sm:$0xff]   ;;  %v759_v26 = vld [vmem:[#allocation2 + $0xb0] ss:$8 sps:$4 sm:$0xff]  }
  0x1d   :  { %135 = vmatpush1.bf16.msra.mxu0 %v736_v6  ;;  %670 = vmatprep.subr.bf16.mxu1 %v754_v21  ;;  %v757_v24 = vld [vmem:[#allocation2 + $0xa0] ss:$8 sps:$4 sm:$0xff]   ;;  %v762_v29 = vld [vmem:[#allocation2 + $0x150] ss:$8 sps:$4 sm:$0xff]  }
  0x1e   :  { %136 = vmatprep.subr.bf16.mxu0 %v737_v7  ;;  %v760_v27 = vld [vmem:[#allocation2 + $0x140] ss:$8 sps:$4 sm:$0xff]   ;;  %v763_v30 = vld [vmem:[#allocation2 + $0xd0] ss:$8 sps:$4 sm:$0xff]  }
  0x1f   :  { %v761_v28 = vld [vmem:[#allocation2 + $0xc0] ss:$8 sps:$4 sm:$0xff]   ;;  %v766_v33 = vld [vmem:[#allocation2 + $0x170] ss:$8 sps:$4 sm:$0xff]  }
  0x20   :  { %671 = vmatpush3.bf16.msra.mxu1 %v755_v22  ;;  %v764_v31 = vld [vmem:[#allocation2 + $0x160] ss:$8 sps:$4 sm:$0xff]   ;;  %v767_v34 = vld [vmem:[#allocation2 + $0xf0] ss:$8 sps:$4 sm:$0xff]  }
  0x21   :  { %137 = vmatpush1.bf16.msra.mxu0 %v739_v8  ;;  %672 = vmatprep.subr.bf16.mxu1 %v756_v23  ;;  %v765_v32 = vld [vmem:[#allocation2 + $0xe0] ss:$8 sps:$4 sm:$0xff]  }
  0x22   :  { %138 = vmatprep.subr.bf16.mxu0 %v740_v9 }
  0x24   :  { %673 = vmatpush3.bf16.msra.mxu1 %v757_v24 }
  0x25   :  { %139 = vmatpush1.bf16.msra.mxu0 %v742_v10  ;;  %674 = vmatprep.subr.bf16.mxu1 %v758_v25 }
  0x26   :  { %140 = vmatprep.subr.bf16.mxu0 %v743_v11  ;;  %v221_v11 = vlaneseq }
  0x28   :  { %675 = vmatpush3.bf16.msra.mxu1 %v759_v26 }
  0x29   :  { %141 = vmatpush1.bf16.msra.mxu0 %v745_v12  ;;  %676 = vmatprep.subr.bf16.mxu1 %v760_v27  ;;  %v886_v12 = vshrl.u32 %v221_v11, 7 }
  0x2a   :  { %142 = vmatprep.subr.bf16.mxu0 %v746_v13  ;;  %v891_v13 = vld [vmem:[%s925_s2] sm:$0x3f] }
  0x2b   :  { %v223_v19 = vsub.s32 0, %v886_v12  ;;  %v233_v24 = vsub.s32 1, %v886_v12 }
  0x2c   :  { %677 = vmatpush3.bf16.msra.mxu1 %v761_v28 }
  0x2d   :  { %143 = vmatpush1.bf16.msra.mxu0 %v748_v14  ;;  %678 = vmatprep.subr.bf16.mxu1 %v762_v29  ;;  %v32_v14 = vld [vmem:[%s925_s2 + $0x8] sm:$0x3f]  ;;  %s845_s2 = smov [#allocation5]  }
  0x2e   :  { %144 = vmatprep.subr.bf16.mxu0 %v749_v15  ;;  %s618_s30 = sshll.u32 %s845_s2, 4  ;;  %s619_s30 = int_to_ptr.vmem [resolvable:$true] %s618_s30 }
  0x2f   :  { %s812_s4 = scalar_lea.vmem %s619_s30, 128  ;;  %p817_p9 = scmp.lt.s32.totalorder %s619_s30, %s619_s30 }
  0x30   :  { %679 = vmatpush3.bf16.msra.mxu1 %v763_v30  ;;  %p813_p8 = scmp.ne.s32.totalorder %s619_s30, %s812_s4  ;;  %p818_p10 = scmp.lt.s32.totalorder %s812_s4, %s812_s4 }
  0x31   :  { %145 = vmatpush1.bf16.msra.mxu0 %v751_v16  ;;  %680 = vmatprep.subr.bf16.mxu1 %v764_v31 }
  0x32   :  { %p819_p11 = por %p818_p10, %p817_p9 }
  0x34   :  { %163 = vmatmul.mubr.bf16.vlgmr.msra.gmra.mrb[0].mxu0 %v33_v18  ;;  %681 = vmatpush3.bf16.msra.mxu1 %v765_v32  ;;  %p820_p12 = pnand %p819_p11, %p813_p8 }
  0x35   :  { %682 = vmatprep.subr.bf16.mxu1 %v766_v33 }
  0x38   :  { %683 = vmatpush3.bf16.msra.mxu1 %v767_v34 }
 0x107   :  { %v164_v35 = vpop.f32.mrb[0].mxu0 }
 0x108   :  { %v171_v36 = vrot.slane %v164_v35, 4  ;;  %v183_v37 = vmul.f32 %v164_v35, %v164_v35  ;;  %v166_v38 = vpop.f32.mrb[1].mxu0 }
 0x109   :  { %v177_v39 = vrot.slane %v166_v38, 4  ;;  %v184_v40 = vmul.f32 %v166_v38, %v166_v38  ;;  %v168_v41 = vpop.f32.mrb[2].mxu0 }
 0x10a   :  { %v172_v42 = vadd.f32 %v171_v36, %v164_v35  ;;  %v185_v43 = vrot.slane %v183_v37, 4  ;;  %v169_v44 = vpop.f32.mrb[3].mxu0 }
 0x10b   :  { %v178_v45 = vadd.f32 %v177_v39, %v166_v38  ;;  %v191_v46 = vrot.slane %v184_v40, 4  ;;  %v769_v44 = vld [vmem:[#allocation2 + $0x190] ss:$8 sps:$4 sm:$0xff]  }
 0x10c   :  { %v173_v47 = vrot.slane %v172_v42, 2  ;;  %v186_v48 = vadd.f32 %v185_v43, %v183_v37  ;;  %v842_v43 = vmov 0.0  }
 0x10d   :  { %v179_v49 = vrot.slane %v178_v45, 2  ;;  %v192_v50 = vadd.f32 %v191_v46, %v184_v40  ;;  %699 = vmatprep.subr.bf16.mxu0 %v842_v43  ;;  %v773_v46 = vld [vmem:[#allocation2 + $0x1d0] ss:$8 sps:$4 sm:$0xff]   ;;  %715 = vmatprep.mubr.msk.bf16.mxu0 %vm843_vm0, %v842_v43 }
 0x10e   :  { %v174_v51 = vadd.f32 %v173_v47, %v172_v42  ;;  %v187_v52 = vrot.slane %v186_v48, 2  ;;  %v768_v42 = vld [vmem:[#allocation2 + $0x180] ss:$8 sps:$4 sm:$0xff]  }
 0x10f   :  { %v180_v53 = vadd.f32 %v179_v49, %v178_v45  ;;  %v193_v54 = vrot.slane %v192_v50, 2  ;;  %700 = vmatpush3.bf16.msra.mxu0 %v768_v42  ;;  %v772_v45 = vld [vmem:[#allocation2 + $0x1c0] ss:$8 sps:$4 sm:$0xff]  }
 0x110   :  { %v175_v55 = vrot.slane %v174_v51, 1  ;;  %v188_v56 = vadd.f32 %v187_v52, %v186_v48  ;;  %701 = vmatprep.subr.bf16.mxu0 %v842_v43  ;;  %v774_v47 = vld [vmem:[#allocation2 + $0x1e0] ss:$8 sps:$4 sm:$0xff]   ;;  %v775_v48 = vld [vmem:[#allocation2 + $0x1f0] ss:$8 sps:$4 sm:$0xff]  }
 0x111   :  { %v181_v57 = vrot.slane %v180_v53, 1  ;;  %v194_v58 = vadd.f32 %v193_v54, %v192_v50 }
 0x112   :  { %v176_v59 = vadd.f32 %v175_v55, %v174_v51  ;;  %v189_v60 = vrot.slane %v188_v56, 1 }
 0x113   :  { %v182_v61 = vadd.f32 %v181_v57, %v180_v53  ;;  %v195_v62 = vrot.slane %v194_v58, 1  ;;  %702 = vmatpush3.bf16.msra.mxu0 %v769_v44 }
 0x114   :  { %v190_v63 = vadd.f32 %v189_v60, %v188_v56  ;;  %v197_v0 = vmul.f32 0.125, %v176_v59  ;;  %703 = vmatprep.subr.bf16.mxu0 %v842_v43 }
 0x115   :  { %v196_v1 = vadd.f32 %v195_v62, %v194_v58  ;;  %v198_v2 = vmul.f32 0.125, %v182_v61 }
 0x116   :  { %v199_v3 = vmul.f32 0.125, %v190_v63  ;;  %v201_v4 = vmul.f32 %v197_v0, %v197_v0 }
 0x117   :  { %v200_v5 = vmul.f32 0.125, %v196_v1  ;;  %v202_v6 = vmul.f32 %v198_v2, %v198_v2 }
 0x118   :  { %v203_v7 = vsub.f32 %v199_v3, %v201_v4 }
 0x119   :  { %v204_v8 = vsub.f32 %v200_v5, %v202_v6 }
 0x11a   :  { %v205_v9 = vadd.f32 1e-05, %v203_v7 }
 0x11b   :  { %v206_v10 = vadd.f32 1e-05, %v204_v8 }
 0x11c   :  { %776 = vrsqrt.f32 %v205_v9 }
 0x11d   :  { %778 = vrsqrt.f32 %v206_v10  ;;  %v440_v10 = vsub.s32 2, %v886_v12 }
 0x126   :  { %v777_v15 = vpop.eup %776 }
 0x127   :  { %v779_v16 = vpop.eup %778  ;;  %v209_v18 = vmul.f32 %v777_v15, %v891_v13 }
 0x128   :  { %v210_v20 = vmul.f32 %v779_v16, %v32_v14 }
 0x129   :  { %v211_v21 = vmul.f32 %v209_v18, %v197_v0  ;;  %v224_v23 = vrot.slane %v209_v18, %v223_v19  ;;  %v445_v18 = vsub.s32 3, %v886_v12 }
 0x12a   :  { %v212_v22 = vmul.f32 %v210_v20, %v198_v2  ;;  %v228_v27 = vrot.slane %v210_v20, %v223_v19 }
 0x12b   :  { %v215_v25 = vrot.slane %v211_v21, 7  ;;  %v229_v30 = vmul.f32 %v224_v23, %v164_v35  ;;  %v770_v35 = vld [vmem:[#allocation2 + $0x1a0] ss:$8 sps:$4 sm:$0xff]  }
 0x12c   :  { %v216_v26 = vrot.slane %v212_v22, 7  ;;  %v230_v32 = vmul.f32 %v228_v27, %v166_v38  ;;  %704 = vmatpush3.bf16.msra.mxu0 %v770_v35  ;;  %v771_v38 = vld [vmem:[#allocation2 + $0x1b0] ss:$8 sps:$4 sm:$0xff]  }
 0x12d   :  { %v219_v28 = vsub.f32 %v891_v13, %v215_v25  ;;  %705 = vmatprep.subr.bf16.mxu0 %v842_v43  ;;  %v844_v25 = vmov 20  }
 0x12e   :  { %v220_v29 = vsub.f32 %v32_v14, %v216_v26  ;;  %727 = vset.pattern.permute.xlu0 %v844_v25 }
 0x12f   :  { %v234_v31 = vrot.slane %v219_v28, %v233_v24 }
 0x130   :  { %v238_v33 = vrot.slane %v220_v29, %v233_v24  ;;  %706 = vmatpush3.bf16.msra.mxu0 %v771_v38 }
 0x131   :  { %v239_v34 = vadd.f32 %v234_v31, %v229_v30  ;;  %707 = vmatprep.subr.bf16.mxu0 %v842_v43 }
 0x132   :  { %v240_v36 = vadd.f32 %v238_v33, %v230_v32 }
 0x133   :  { %v241_v37 = vmax.f32 %v239_v34, 0.0 }
 0x134   :  { %v242_v39 = vmax.f32 %v240_v36, 0.0  ;;  %708 = vmatpush3.bf16.msra.mxu0 %v772_v45 }
 0x135   :  { %v243_v41 = vpack.c.bf16 %v241_v37, %v241_v37  ;;  %709 = vmatprep.subr.bf16.mxu0 %v842_v43 }
 0x136   :  { %v244_v40 = vpack.c.bf16 %v242_v39, %v242_v39 }
 0x138   :  { %405 = vmatprep.mubr.bf16.mxu1 %v244_v40  ;;  %710 = vmatpush3.bf16.msra.mxu0 %v773_v46 }
 0x139   :  { %406 = vmatmul.mubr.bf16.vlgmr.msra.gmra.mrb[0].mxu1 %v243_v41  ;;  %711 = vmatprep.subr.bf16.mxu0 %v842_v43 }
 0x13c   :  { %712 = vmatpush3.bf16.msra.mxu0 %v774_v47 }
 0x13d   :  { %713 = vmatprep.subr.bf16.mxu0 %v842_v43 }
 0x140   :  { %714 = vmatpush3.bf16.msra.mxu0 %v775_v48 }
 0x20c   :  { %v684_v49 = vpop.f32.mrb[0].mxu1 }
 0x20d   :  { %v685_v50 = vpop.f32.mrb[1].mxu1 }
 0x20e   :  { %v686_v51 = vadd.f32 %v685_v50, %v684_v49  ;;  %v687_v52 = vpop.f32.mrb[2].mxu1  ;;  %v581_v50 = vsub.s32 4, %v886_v12 }
 0x20f   :  { %v688_v53 = vpop.f32.mrb[3].mxu1 }
 0x210   :  { %v413_v54 = vrot.slane %v686_v51, 4  ;;  %v419_v55 = vmul.f32 %v686_v51, %v686_v51 }
 0x212   :  { %v414_v56 = vadd.f32 %v686_v51, %v413_v54  ;;  %v420_v57 = vrot.slane %v419_v55, 4  ;;  %v586_v54 = vsub.s32 5, %v886_v12  ;;  %v608_v12 = vand.u32 127, %v221_v11 }
 0x214   :  { %v415_v58 = vrot.slane %v414_v56, 2  ;;  %v421_v59 = vadd.f32 %v420_v57, %v419_v55  ;;  %vm609_vm1 = vcmp.eq.s32.totalorder %v608_v12, 20 }
 0x216   :  { %v416_v60 = vadd.f32 %v415_v58, %v414_v56  ;;  %v422_v61 = vrot.slane %v421_v59, 2 }
 0x218   :  { %v417_v62 = vrot.slane %v416_v60, 1  ;;  %v423_v63 = vadd.f32 %v422_v61, %v421_v59 }
 0x21a   :  { %v418_v0 = vadd.f32 %v417_v62, %v416_v60  ;;  %v424_v1 = vrot.slane %v423_v63, 1 }
 0x21c   :  { %v425_v2 = vadd.f32 %v424_v1, %v423_v63  ;;  %v426_v3 = vmul.f32 0.125, %v418_v0 }
 0x21e   :  { %v427_v4 = vmul.f32 0.125, %v425_v2  ;;  %v428_v5 = vmul.f32 %v426_v3, %v426_v3 }
 0x220   :  { %v429_v6 = vsub.f32 %v427_v4, %v428_v5 }
 0x222   :  { %v430_v7 = vadd.f32 1e-05, %v429_v6 }
 0x224   :  { %780 = vrsqrt.f32 %v430_v7 }
 0x22e   :  { %v781_v8 = vpop.eup %780 }
 0x22f   :  { %v432_v9 = vmul.f32 %v781_v8, %v891_v13 }
 0x231   :  { %v433_v14 = vmul.f32 %v432_v9, %v426_v3  ;;  %v441_v15 = vrot.slane %v432_v9, %v440_v10 }
 0x233   :  { %v435_v16 = vrot.slane %v433_v14, 7  ;;  %v442_v20 = vmul.f32 %v686_v51, %v441_v15 }
 0x235   :  { %v437_v19 = vsub.f32 %v891_v13, %v435_v16 }
 0x237   :  { %v446_v21 = vrot.slane %v437_v19, %v445_v18 }
 0x239   :  { %v447_v22 = vadd.f32 %v446_v21, %v442_v20 }
 0x23b   :  { %v448_v23 = vmax.f32 %v447_v22, 0.0 }
 0x23d   :  { %v449_v24 = vpack.c.bf16 %v448_v23, %v448_v23 }
 0x23f   :  { %716 = vmatmul.mubr.bf16.vlgmr.msra.gmra.mrb[4].mxu0 %v449_v24 }
 0x312   :  { %v548_v26 = vpop.f32.mrb[4].mxu0 }
 0x313   :  { %v554_v27 = vrot.slane %v548_v26, 4  ;;  %v560_v28 = vmul.f32 %v548_v26, %v548_v26  ;;  %v717_v29 = vpop.f32.mrb[5].mxu0 }
 0x314   :  { %v551_v30 = vpop.f32.mrb[6].mxu0 }
 0x315   :  { %v555_v31 = vadd.f32 %v554_v27, %v548_v26  ;;  %v561_v32 = vrot.slane %v560_v28, 4  ;;  %v718_v33 = vpop.f32.mrb[7].mxu0 }
 0x317   :  { %v556_v34 = vrot.slane %v555_v31, 2  ;;  %v562_v36 = vadd.f32 %v561_v32, %v560_v28 }
 0x319   :  { %v557_v37 = vadd.f32 %v556_v34, %v555_v31  ;;  %v563_v39 = vrot.slane %v562_v36, 2 }
 0x31b   :  { %v558_v40 = vrot.slane %v557_v37, 1  ;;  %v564_v41 = vadd.f32 %v563_v39, %v562_v36 }
 0x31d   :  { %v559_v42 = vadd.f32 %v558_v40, %v557_v37  ;;  %v565_v43 = vrot.slane %v564_v41, 1 }
 0x31f   :  { %v566_v44 = vadd.f32 %v565_v43, %v564_v41  ;;  %v567_v35 = vmul.f32 0.125, %v559_v42 }
 0x321   :  { %v568_v38 = vmul.f32 0.125, %v566_v44  ;;  %v569_v45 = vmul.f32 %v567_v35, %v567_v35 }
 0x323   :  { %v570_v46 = vsub.f32 %v568_v38, %v569_v45 }
 0x325   :  { %v571_v47 = vadd.f32 1e-05, %v570_v46 }
 0x327   :  { %782 = vrsqrt.f32 %v571_v47 }
 0x331   :  { %v783_v48 = vpop.eup %782 }
 0x332   :  { %v573_v49 = vmul.f32 %v783_v48, %v891_v13 }
 0x334   :  { %v574_v51 = vmul.f32 %v573_v49, %v567_v35  ;;  %v582_v53 = vrot.slane %v573_v49, %v581_v50 }
 0x336   :  { %v576_v52 = vrot.slane %v574_v51, 7  ;;  %v583_v56 = vmul.f32 %v582_v53, %v548_v26 }
 0x338   :  { %v578_v55 = vsub.f32 %v891_v13, %v576_v52 }
 0x33a   :  { %v587_v57 = vrot.slane %v578_v55, %v586_v54 }
 0x33c   :  { %v588_v58 = vadd.f32 %v587_v57, %v583_v56 }
 0x33e   :  { %v667_v59 = vmul.f32 -1.442695, %v588_v58 }
 0x340   :  { %784 = vpow2.f32 %v667_v59 }
 0x34a   :  { %v785_v60 = vpop.eup %784 }
 0x34b   :  { %v592_v61 = vadd.f32 1.0, %v785_v60 }
 0x34d   :  { %786 = vrcp.f32 %v592_v61 }
 0x357   :  { %v787_v62 = vpop.eup %786 }
 0x358   :  { %597 = vperm.xlu0 %727, %v787_v62  }
 0x3d7   :  { %v598_v63 = vpop.permute.xlu0 %597 }
 0x3d8   :  { %v601_v0 = vmul.f32 %v787_v62, %v598_v63  ;;  %v600_v13 = vmul.f32 %v598_v63, %v881_v17 }
 0x3da   :  { %v602_v1 = vadd.f32 %v601_v0, %v881_v17 }
 0x3dc   :  { %v603_v2 = vmul.f32 %v602_v1, %v602_v1 }
 0x3de   :  { %788 = vrcp.f32 %v603_v2 }
 0x3e8   :  { %v789_v3 = vpop.eup %788 }
 0x3e9   :  { %v605_v4 = vmul.f32 %v789_v3, %v600_v13 }
 0x3eb   :  { %v606_v5 = vmin.f32 %v605_v4, 1.0 }
 0x3ed   :  { %v610_v6 = vsel %vm609_vm1, %v787_v62, %v606_v5 }
 0x3ee   :  { %611 = vst [vmem:[#allocation5] sm:$0xff] %v610_v6 }
 0x3ef   :  { %823 = shalt.err (!%p820_p12)
}
 0x3f0   :  { %s824_s7 = scalar_lea.hbm %s926_s3, 128 }
 0x3f1   :  { %p825_p13 = scmp.ne.s32.totalorder %s926_s3, %s824_s7  ;;  %p828_p0 = scmp.lt.u32.totalorder %s824_s7, %s926_s3 }
 0x3f3   :  { %p830_p1 = pnand %p828_p0, %p825_p13 }
 0x3f5   :  { %833 = shalt.err (!%p830_p1)
}
 0x3f6   :  { %621 = dma.vmem_to_hbm [thread:$0]  %s619_s30, 128, %s926_s3, [#allocation4]  }
 0x3f7   :  { %836 = dma.done.wait [#allocation4], 128  }
 0x3f8   :  { %837 = vsyncadd [#allocation4], 4294967168 }
 0x3f9   :  { %625 = vsyncpa [#allocation3], 1 }
 0x3fa   :  { %626 = vsyncpa [#allocation4], 1 }

</bundles_post_ra>
